<compile_context>
chip_gen: v7x
topology: tpu7x:2x2x1
jax: 0.10.0
libtpu: 0.0.40
codegen_flags: <defaults>
</compile_context>

<pallas_src>
import functools

import jax
import jax.numpy as jnp
from jax.experimental import pallas as pl
from jax.experimental.pallas import tpu as pltpu


# ----------------------------------------------------------------------------
# Kernel
# ----------------------------------------------------------------------------
def _dueling_dqn_kernel(x_ref,
                        wh1_ref, bh1_ref, wh2_ref, bh2_ref,
                        wva1_ref, bva1_ref, whead_ref, bhead_ref,
                        q_ref, *, n_actions, compute_dtype):
    cdt = compute_dtype
    x = x_ref[...].astype(cdt)

    # ---- hidden MLP: Linear -> ReLU -> Linear (no trailing ReLU) ----
    h = jnp.dot(x, wh1_ref[...], preferred_element_type=jnp.float32) + bh1_ref[...]
    h = jnp.maximum(h, 0.0)
    h = jnp.dot(h.astype(cdt), wh2_ref[...],
                preferred_element_type=jnp.float32) + bh2_ref[...]

    # ---- fused value+advantage first layers: one wide matmul + ReLU ----
    va = jnp.dot(h.astype(cdt), wva1_ref[...],
                 preferred_element_type=jnp.float32) + bva1_ref[...]
    va = jnp.maximum(va, 0.0)

    # ---- fused, lane-dense head matmul (VMEM only) -------------------------
    # columns [0, A): advantage, column A: value, columns (A, 128): exact zeros
    head = jnp.dot(va.astype(cdt), whead_ref[...],
                   preferred_element_type=jnp.float32) + bhead_ref[...]

    # Padded columns are exactly zero, so sum(head) == sum(advantage) + value.
    v = head[:, n_actions:n_actions + 1]              # (TB, 1) value
    total = jnp.sum(head, axis=1, keepdims=True)      # (TB, 1)
    a_mean = (total - v) * (1.0 / n_actions)          # mean of the advantages

    # Only the real advantage columns are combined and written back to HBM;
    # the value column / zero pad never leave VMEM.
    q = head[:, :n_actions] + (v - a_mean)
    q_ref[...] = q.astype(q_ref.dtype)


# ----------------------------------------------------------------------------
# Batch-tiling helpers
# ----------------------------------------------------------------------------
def _round_up(x, m):
    return ((x + m - 1) // m) * m


def _min_grid_steps():
    """v7x has 2 TensorCores/chip; 'parallel' grid axes shard across them, so
    keep >= 2 grid steps there.  v5e/v6e have 1 TC -> no constraint."""
    try:
        kind = jax.devices()[0].device_kind.lower()
    except Exception:
        kind = ""
    return 2 if "v7" in kind else 1


def _choose_batch_tiling(B, block_b, min_steps):
    """Pick (tb, n_blocks, b_pad) for the 1-D batch grid.

    Preference order: single full-array block for tiny batches; a tile that
    divides B exactly (avoids a jnp.pad HBM copy of x); otherwise pad.
    All non-full tiles are multiples of 8 (sublane alignment).
    """
    block_b = max(8, (block_b // 8) * 8)
    # Tiny batches: one full-array block (exempt from the (8,128) rule).
    if B <= block_b and (min_steps <= 1 or B < 16 * min_steps):
        return B, 1, B
    # Target tile: amortize per-step overhead but keep >= min_steps steps.
    cap = min(block_b, _round_up(pl.cdiv(B, min_steps), 8))
    floor_t = max(8, min(cap, 256))
    t = cap
    while t >= floor_t:
        if B % t == 0 and B // t >= min_steps:
            return t, B // t, B
        t -= 8
    # Ragged fall-back: pad the batch up to a multiple of `cap`.
    n = pl.cdiv(B, cap)
    return cap, n, n * cap


# ----------------------------------------------------------------------------
# Wrapper
# ----------------------------------------------------------------------------
def dueling_dqn_forward(x, packed, *, block_b=2048):
    """x: (B, input_size); packed: output of pack_params().

    `block_b` is the target batch tile (sweep 1024-4096 for large batches).
    The matmul-operand dtype is taken from the packed weights (f32 or bf16);
    x is consumed in whatever dtype the producer emitted.
    """
    B, in_dim = x.shape
    n_actions = packed["n_actions"]
    compute_dtype = packed["wh1"].dtype

    tb, n_blocks, b_pad = _choose_batch_tiling(B, block_b, _min_grid_steps())
    if b_pad != B:
        # Fall-back only (awkward batch sizes): pads a handful of rows.
        x = jnp.pad(x, ((0, b_pad - B), (0, 0)))

    weights = (packed["wh1"], packed["bh1"], packed["wh2"], packed["bh2"],
               packed["wva1"], packed["bva1"], packed["whead"], packed["bhead"])

    def resident(a):
        # Whole (tiny) weight/bias stays VMEM-resident across all grid steps.
        return pl.BlockSpec(a.shape, lambda i, _nd=a.ndim: (0,) * _nd)

    kernel = functools.partial(_dueling_dqn_kernel,
                               n_actions=n_actions,
                               compute_dtype=compute_dtype)

    q = pl.pallas_call(
        kernel,
        out_shape=jax.ShapeDtypeStruct((b_pad, n_actions), jnp.float32),
        grid=(n_blocks,),
        in_specs=[pl.BlockSpec((tb, in_dim), lambda i: (i, 0))]
                 + [resident(a) for a in weights],
        out_specs=pl.BlockSpec((tb, n_actions), lambda i: (i, 0)),
        compiler_params=pltpu.CompilerParams(
            dimension_semantics=("parallel",)),
    )(x, *weights)

    return q if b_pad == B else q[:B]


# ----------------------------------------------------------------------------
# Parameter construction / packing
# ----------------------------------------------------------------------------
def _linear_init(key, fan_in, fan_out):
    """PyTorch-style Linear init: U(-1/sqrt(fan_in), 1/sqrt(fan_in)).
    Weight returned pre-transposed as (fan_in, fan_out)."""
    kw, kb = jax.random.split(key)
    bound = 1.0 / jnp.sqrt(jnp.float32(fan_in))
    w = jax.random.uniform(kw, (fan_in, fan_out), jnp.float32, -bound, bound)
    b = jax.random.uniform(kb, (1, fan_out), jnp.float32, -bound, bound)
    return w, b


def make_params(key, input_size, hidden_layers, v_net_layers, a_net_layers):
    assert v_net_layers[0] == hidden_layers[-1] and a_net_layers[0] == hidden_layers[-1]
    ks = jax.random.split(key, 6)
    p = {}
    p["wh1"], p["bh1"] = _linear_init(ks[0], input_size, hidden_layers[0])
    p["wh2"], p["bh2"] = _linear_init(ks[1], hidden_layers[0], hidden_layers[1])
    p["wv1"], p["bv1"] = _linear_init(ks[2], v_net_layers[0], v_net_layers[1])
    p["wv2"], p["bv2"] = _linear_init(ks[3], v_net_layers[1], v_net_layers[2])
    p["wa1"], p["ba1"] = _linear_init(ks[4], a_net_layers[0], a_net_layers[1])
    p["wa2"], p["ba2"] = _linear_init(ks[5], a_net_layers[1], a_net_layers[2])
    return p


def pack_params(p, compute_dtype=jnp.float32):
    """Fuse branch/head weights and zero-pad the head to a lane-dense width.

    Adding exact-zero columns/rows never changes f32-accumulated results, so
    the fused math is equivalent to the original per-branch Linears.
    `compute_dtype=jnp.bfloat16` is a valid MXU-operand fast path on v5e, v6e
    and v7x (f32 accumulation; biases and elementwise math stay f32).
    """
    v_hid = p["wv2"].shape[0]
    a_hid, n_actions = p["wa2"].shape
    n_out = max(128, pl.cdiv(n_actions + 1, 128) * 128)   # lane-dense head width

    # Branch first layers fused along the output dim: va = relu(h @ [wv1 | wa1]).
    wva1 = jnp.concatenate([p["wv1"], p["wa1"]], axis=1)      # (h1, v_hid + a_hid)
    bva1 = jnp.concatenate([p["bv1"], p["ba1"]], axis=1)      # (1,  v_hid + a_hid)

    # Block-layout head: cols [0,A) <- advantage, col A <- value, rest zero.
    whead = jnp.zeros((v_hid + a_hid, n_out), jnp.float32)
    whead = whead.at[v_hid:, :n_actions].set(p["wa2"])
    whead = whead.at[:v_hid, n_actions:n_actions + 1].set(p["wv2"])
    bhead = jnp.zeros((1, n_out), jnp.float32)
    bhead = bhead.at[:, :n_actions].set(p["ba2"])
    bhead = bhead.at[:, n_actions:n_actions + 1].set(p["bv2"])

    wdt = compute_dtype  # matmul operand dtype; biases stay f32
    return dict(
        wh1=p["wh1"].astype(wdt), bh1=p["bh1"],
        wh2=p["wh2"].astype(wdt), bh2=p["bh2"],
        wva1=wva1.astype(wdt), bva1=bva1,
        whead=whead.astype(wdt), bhead=bhead,
        n_actions=n_actions, n_out=n_out,
    )


# ----------------------------------------------------------------------------
# Plain-JAX reference mirroring the PyTorch module (for verification)
# ----------------------------------------------------------------------------
def reference_forward(x, p):
    h = jnp.maximum(x @ p["wh1"] + p["bh1"], 0.0)
    h = h @ p["wh2"] + p["bh2"]
    v = jnp.maximum(h @ p["wv1"] + p["bv1"], 0.0)
    v = v @ p["wv2"] + p["bv2"]
    a = jnp.maximum(h @ p["wa1"] + p["ba1"], 0.0)
    a = a @ p["wa2"] + p["ba2"]
    return v + a - jnp.mean(a, axis=1, keepdims=True)


# ----------------------------------------------------------------------------
if __name__ == "__main__":
    # DuelingDQN(input_size=16, hidden_layers=[32, 32],
    #            v_net_layers=[32, 32, 1], a_net_layers=[32, 32, 4])
    batch = 2
    input_size = 16
    hidden_layers = [32, 32]
    v_net_layers = [32, 32, 1]
    a_net_layers = [32, 32, 4]
    n_actions = a_net_layers[-1]

    key = jax.random.PRNGKey(0)
    kx, kp, kx2 = jax.random.split(key, 3)
    x = jax.random.normal(kx, (batch, input_size), jnp.float32)
    raw = make_params(kp, input_size, hidden_layers, v_net_layers, a_net_layers)
    q_ref = reference_forward(x, raw)

    # ---- f32 path (exact parity with the PyTorch f32 module, tiny batch) ----
    packed_f32 = pack_params(raw, jnp.float32)
    q = jax.block_until_ready(dueling_dqn_forward(x, packed_f32))
    assert q.shape == (batch, n_actions)
    assert jnp.allclose(q, q_ref, atol=1e-5, rtol=1e-5), (q, q_ref)

    # ---- bf16 matmul-operand fast path (v5e/v6e/v7x; f32 accumulation) ----
    # Producer emits bf16 x directly -> halves input HBM streaming.
    packed_bf16 = pack_params(raw, jnp.bfloat16)
    x_bf16 = x.astype(jnp.bfloat16)
    q_bf16 = jax.block_until_ready(dueling_dqn_forward(x_bf16, packed_bf16))
    assert jnp.allclose(q_bf16, q_ref, atol=1e-1, rtol=1e-1), (q_bf16, q_ref)

    # ---- exercise multi-step batch grid + ragged-tail fallback ----
    x_big = jax.random.normal(kx2, (300, input_size), jnp.float32)
    q_big = jax.block_until_ready(dueling_dqn_forward(x_big, packed_f32,
                                                      block_b=128))
    q_big_ref = reference_forward(x_big, raw)
    assert q_big.shape == (300, n_actions)
    assert jnp.allclose(q_big, q_big_ref, atol=1e-5, rtol=1e-5)

    print("KERNEL_OK")
</pallas_src>

<mosaic_0001>
module attributes {stable_mosaic.version = 11 : i64} {
  func.func @_dueling_dqn_kernel(%arg0: i32, %arg1: memref<2x16xf32, #tpu.memory_space<vmem>>, %arg2: memref<16x32xf32, #tpu.memory_space<vmem>>, %arg3: memref<1x32xf32, #tpu.memory_space<vmem>>, %arg4: memref<32x32xf32, #tpu.memory_space<vmem>>, %arg5: memref<1x32xf32, #tpu.memory_space<vmem>>, %arg6: memref<32x64xf32, #tpu.memory_space<vmem>>, %arg7: memref<1x64xf32, #tpu.memory_space<vmem>>, %arg8: memref<64x128xf32, #tpu.memory_space<vmem>>, %arg9: memref<1x128xf32, #tpu.memory_space<vmem>>, %arg10: memref<2x4xf32, #tpu.memory_space<vmem>>) attributes {dimension_semantics = [#tpu.dimension_semantics<parallel>], iteration_bounds = array<i64: 1>, scalar_prefetch = 0 : i64, scratch_operands = 0 : i64, tpu.core_type = #tpu.core_type<tc>, window_params = [{transform_indices = @transform_0, window_bounds = array<i64: 2, 16>}, {pipeline_mode = #tpu.pipeline_mode<synchronous>, transform_indices = @transform_1, window_bounds = array<i64: 16, 32>}, {pipeline_mode = #tpu.pipeline_mode<synchronous>, transform_indices = @transform_2, window_bounds = array<i64: 1, 32>}, {pipeline_mode = #tpu.pipeline_mode<synchronous>, transform_indices = @transform_3, window_bounds = array<i64: 32, 32>}, {pipeline_mode = #tpu.pipeline_mode<synchronous>, transform_indices = @transform_4, window_bounds = array<i64: 1, 32>}, {pipeline_mode = #tpu.pipeline_mode<synchronous>, transform_indices = @transform_5, window_bounds = array<i64: 32, 64>}, {pipeline_mode = #tpu.pipeline_mode<synchronous>, transform_indices = @transform_6, window_bounds = array<i64: 1, 64>}, {pipeline_mode = #tpu.pipeline_mode<synchronous>, transform_indices = @transform_7, window_bounds = array<i64: 64, 128>}, {pipeline_mode = #tpu.pipeline_mode<synchronous>, transform_indices = @transform_8, window_bounds = array<i64: 1, 128>}, {transform_indices = @transform_9, window_bounds = array<i64: 2, 4>}]} {
    %c0 = arith.constant 0 : index
    %c0_0 = arith.constant 0 : index
    %0 = vector.load %arg1[%c0, %c0_0] : memref<2x16xf32, #tpu.memory_space<vmem>>, vector<2x16xf32>
    %c0_1 = arith.constant 0 : index
    %c0_2 = arith.constant 0 : index
    %1 = vector.load %arg2[%c0_1, %c0_2] : memref<16x32xf32, #tpu.memory_space<vmem>>, vector<16x32xf32>
    %cst = arith.constant dense<0.000000e+00> : vector<2x32xf32>
    %2 = tpu.matmul %0, %1, %cst {dimension_numbers = #tpu.dot_dimension_numbers<[1], [0], [0], [1], [0, 0, 1, 1], [], []>} : vector<2x16xf32>, vector<16x32xf32>, vector<2x32xf32> -> vector<2x32xf32>
    %c0_3 = arith.constant 0 : index
    %c0_4 = arith.constant 0 : index
    %3 = vector.load %arg3[%c0_3, %c0_4] : memref<1x32xf32, #tpu.memory_space<vmem>>, vector<1x32xf32>
    %4 = vector.broadcast %3 : vector<1x32xf32> to vector<2x32xf32>
    %5 = arith.addf %2, %4 : vector<2x32xf32>
    %cst_5 = arith.constant 0.000000e+00 : f32
    %6 = vector.broadcast %cst_5 : f32 to vector<2x32xf32>
    %7 = arith.maximumf %5, %6 : vector<2x32xf32>
    %c0_6 = arith.constant 0 : index
    %c0_7 = arith.constant 0 : index
    %8 = vector.load %arg4[%c0_6, %c0_7] : memref<32x32xf32, #tpu.memory_space<vmem>>, vector<32x32xf32>
    %cst_8 = arith.constant dense<0.000000e+00> : vector<2x32xf32>
    %9 = tpu.matmul %7, %8, %cst_8 {dimension_numbers = #tpu.dot_dimension_numbers<[1], [0], [0], [1], [0, 0, 1, 1], [], []>} : vector<2x32xf32>, vector<32x32xf32>, vector<2x32xf32> -> vector<2x32xf32>
    %c0_9 = arith.constant 0 : index
    %c0_10 = arith.constant 0 : index
    %10 = vector.load %arg5[%c0_9, %c0_10] : memref<1x32xf32, #tpu.memory_space<vmem>>, vector<1x32xf32>
    %11 = vector.broadcast %10 : vector<1x32xf32> to vector<2x32xf32>
    %12 = arith.addf %9, %11 : vector<2x32xf32>
    %c0_11 = arith.constant 0 : index
    %c0_12 = arith.constant 0 : index
    %13 = vector.load %arg6[%c0_11, %c0_12] : memref<32x64xf32, #tpu.memory_space<vmem>>, vector<32x64xf32>
    %cst_13 = arith.constant dense<0.000000e+00> : vector<2x64xf32>
    %14 = tpu.matmul %12, %13, %cst_13 {dimension_numbers = #tpu.dot_dimension_numbers<[1], [0], [0], [1], [0, 0, 1, 1], [], []>} : vector<2x32xf32>, vector<32x64xf32>, vector<2x64xf32> -> vector<2x64xf32>
    %c0_14 = arith.constant 0 : index
    %c0_15 = arith.constant 0 : index
    %15 = vector.load %arg7[%c0_14, %c0_15] : memref<1x64xf32, #tpu.memory_space<vmem>>, vector<1x64xf32>
    %16 = vector.broadcast %15 : vector<1x64xf32> to vector<2x64xf32>
    %17 = arith.addf %14, %16 : vector<2x64xf32>
    %cst_16 = arith.constant 0.000000e+00 : f32
    %18 = vector.broadcast %cst_16 : f32 to vector<2x64xf32>
    %19 = arith.maximumf %17, %18 : vector<2x64xf32>
    %c0_17 = arith.constant 0 : index
    %c0_18 = arith.constant 0 : index
    %20 = vector.load %arg8[%c0_17, %c0_18] : memref<64x128xf32, #tpu.memory_space<vmem>>, vector<64x128xf32>
    %cst_19 = arith.constant dense<0.000000e+00> : vector<2x128xf32>
    %21 = tpu.matmul %19, %20, %cst_19 {dimension_numbers = #tpu.dot_dimension_numbers<[1], [0], [0], [1], [0, 0, 1, 1], [], []>} : vector<2x64xf32>, vector<64x128xf32>, vector<2x128xf32> -> vector<2x128xf32>
    %c0_20 = arith.constant 0 : index
    %c0_21 = arith.constant 0 : index
    %22 = vector.load %arg9[%c0_20, %c0_21] : memref<1x128xf32, #tpu.memory_space<vmem>>, vector<1x128xf32>
    %23 = vector.broadcast %22 : vector<1x128xf32> to vector<2x128xf32>
    %24 = arith.addf %21, %23 : vector<2x128xf32>
    %25 = vector.extract_strided_slice %24 {offsets = [0, 4], sizes = [2, 1], strides = [1, 1]} : vector<2x128xf32> to vector<2x1xf32>
    %cst_22 = arith.constant dense<0.000000e+00> : vector<2xf32>
    %26 = vector.multi_reduction <add>, %24, %cst_22 [1] : vector<2x128xf32> to vector<2xf32>
    %27 = vector.shape_cast %26 : vector<2xf32> to vector<2x1xf32>
    %28 = arith.subf %27, %25 : vector<2x1xf32>
    %cst_23 = arith.constant 2.500000e-01 : f32
    %29 = vector.broadcast %cst_23 : f32 to vector<2x1xf32>
    %30 = arith.mulf %28, %29 : vector<2x1xf32>
    %31 = vector.extract_strided_slice %24 {offsets = [0, 0], sizes = [2, 4], strides = [1, 1]} : vector<2x128xf32> to vector<2x4xf32>
    %32 = arith.subf %25, %30 : vector<2x1xf32>
    %33 = vector.broadcast %32 : vector<2x1xf32> to vector<2x4xf32>
    %34 = arith.addf %31, %33 : vector<2x4xf32>
    %c0_24 = arith.constant 0 : index
    %c0_25 = arith.constant 0 : index
    %35 = vector.load %arg10[%c0_24, %c0_25] : memref<2x4xf32, #tpu.memory_space<vmem>>, vector<2x4xf32>
    tpu.vector_store %arg10[%c0_24, %c0_25], %34 {strides = array<i32>} : memref<2x4xf32, #tpu.memory_space<vmem>>, vector<2x4xf32>,
    return
  }
  func.func @transform_0(%arg0: i32) -> (i32, i32) {
    %c0_i32 = arith.constant 0 : i32
    %c0_i32_0 = arith.constant 0 : i32
    return %arg0, %c0_i32 : i32, i32
  }
  func.func @transform_1(%arg0: i32) -> (i32, i32) {
    %c0_i32 = arith.constant 0 : i32
    %c0_i32_0 = arith.constant 0 : i32
    %c0_i32_1 = arith.constant 0 : i32
    return %c0_i32, %c0_i32_0 : i32, i32
  }
  func.func @transform_2(%arg0: i32) -> (i32, i32) {
    %c0_i32 = arith.constant 0 : i32
    %c0_i32_0 = arith.constant 0 : i32
    %c0_i32_1 = arith.constant 0 : i32
    return %c0_i32, %c0_i32_0 : i32, i32
  }
  func.func @transform_3(%arg0: i32) -> (i32, i32) {
    %c0_i32 = arith.constant 0 : i32
    %c0_i32_0 = arith.constant 0 : i32
    %c0_i32_1 = arith.constant 0 : i32
    return %c0_i32, %c0_i32_0 : i32, i32
  }
  func.func @transform_4(%arg0: i32) -> (i32, i32) {
    %c0_i32 = arith.constant 0 : i32
    %c0_i32_0 = arith.constant 0 : i32
    %c0_i32_1 = arith.constant 0 : i32
    return %c0_i32, %c0_i32_0 : i32, i32
  }
  func.func @transform_5(%arg0: i32) -> (i32, i32) {
    %c0_i32 = arith.constant 0 : i32
    %c0_i32_0 = arith.constant 0 : i32
    %c0_i32_1 = arith.constant 0 : i32
    return %c0_i32, %c0_i32_0 : i32, i32
  }
  func.func @transform_6(%arg0: i32) -> (i32, i32) {
    %c0_i32 = arith.constant 0 : i32
    %c0_i32_0 = arith.constant 0 : i32
    %c0_i32_1 = arith.constant 0 : i32
    return %c0_i32, %c0_i32_0 : i32, i32
  }
  func.func @transform_7(%arg0: i32) -> (i32, i32) {
    %c0_i32 = arith.constant 0 : i32
    %c0_i32_0 = arith.constant 0 : i32
    %c0_i32_1 = arith.constant 0 : i32
    return %c0_i32, %c0_i32_0 : i32, i32
  }
  func.func @transform_8(%arg0: i32) -> (i32, i32) {
    %c0_i32 = arith.constant 0 : i32
    %c0_i32_0 = arith.constant 0 : i32
    %c0_i32_1 = arith.constant 0 : i32
    return %c0_i32, %c0_i32_0 : i32, i32
  }
  func.func @transform_9(%arg0: i32) -> (i32, i32) {
    %c0_i32 = arith.constant 0 : i32
    %c0_i32_0 = arith.constant 0 : i32
    return %arg0, %c0_i32 : i32, i32
  }
}

</mosaic_0001>

<bundles_post_ra>
// kernel: tpu_custom_call.1
= control target key start
LH: loop header
LB: loop body
LE: loop exit
PB: predicated region body
PF: predicated region fallthrough
CT: control target
= control target key end

     0   :  { %14 = vsyncpa [#allocation3], 0  ;;  %s897_s0 = inlined_call_operand.hbm [shape: f32[2,16], index: 0, kind: input, shape index: {}]   ;;  %s898_s1 = inlined_call_operand.hbm [shape: f32[16,32], index: 1, kind: input, shape index: {}]   ;;  %s899_s2 = inlined_call_operand.vmem [shape: f32[1,32], index: 2, kind: input, shape index: {}]   ;;  %s900_s3 = inlined_call_operand.hbm [shape: f32[32,32], index: 3, kind: input, shape index: {}]   ;;  %s901_s4 = inlined_call_operand.vmem [shape: f32[1,32], index: 4, kind: input, shape index: {}]   ;;  %s902_s5 = inlined_call_operand.hbm [shape: f32[32,64], index: 5, kind: input, shape index: {}]   ;;  %s903_s6 = inlined_call_operand.vmem [shape: f32[1,64], index: 6, kind: input, shape index: {}]   ;;  %s904_s7 = inlined_call_operand.hbm [shape: f32[64,128], index: 7, kind: input, shape index: {}]   ;;  %s905_s8 = inlined_call_operand.vmem [shape: f32[1,128], index: 8, kind: input, shape index: {}]   ;;  %s906_s9 = inlined_call_operand.hbm [shape: f32[2,4], index: 9, kind: output, shape index: {}]  }
   0x1   :  { %15 = vsyncpa [#allocation6], 0 }
   0x2   :  { %16 = vsyncpa [#allocation9], 0 }
   0x3   :  { %17 = vsyncpa [#allocation4], 0  ;;  %s733_s30 = smov [#allocation5]   ;;  %s593_s13 = scalar_lea.hbm %s898_s1, 256 }
   0x4   :  { %s33_s10 = sshll.u32 %s733_s30, 4  ;;  %p594_p0 = scmp.ne.s32.totalorder %s898_s1, %s593_s13  ;;  %s34_s10 = int_to_ptr.vmem [resolvable:$true] %s33_s10 }
   0x5   :  { %p597_p1 = scmp.lt.u32.totalorder %s593_s13, %s898_s1 }
   0x7   :  { %p599_p2 = pnand %p597_p1, %p594_p0 }
   0x9   :  { %602 = shalt.err (!%p599_p2)
}
   0xa   :  { %s603_s18 = scalar_lea.vmem %s34_s10, 256  ;;  %p608_p4 = scmp.lt.s32.totalorder %s34_s10, %s34_s10 }
   0xb   :  { %p604_p3 = scmp.ne.s32.totalorder %s34_s10, %s603_s18  ;;  %p609_p5 = scmp.lt.s32.totalorder %s603_s18, %s603_s18 }
   0xd   :  { %p610_p6 = por %p609_p5, %p608_p4 }
   0xf   :  { %p611_p7 = pnand %p610_p6, %p604_p3 }
  0x11   :  { %614 = shalt.err (!%p611_p7)
}
  0x12   :  { %s734_s19 = smov 128   ;;  %s735_s20 = smov 8  }
  0x13   :  { %39 = dma.hbm_to_vmem [thread:$0]  %s898_s1, 256, %s34_s10, [#allocation6], %s734_s19, %s734_s19, %s735_s20  }
  0x14   :  { %s736_s23 = smov [#allocation8]   ;;  %s737_s25 = smov [#allocation2]  }
  0x15   :  { %s61_s24 = sshll.u32 %s736_s23, 4  ;;  %s24_s26 = sshll.u32 %s737_s25, 4  ;;  %s62_s24 = int_to_ptr.vmem [resolvable:$true] %s61_s24  ;;  %s25_s26 = int_to_ptr.vmem [resolvable:$true] %s24_s26 }
  0x16   :  { %s615_s29 = scalar_lea.hbm %s902_s5, 512 }
  0x17   :  { %p616_p8 = scmp.ne.s32.totalorder %s902_s5, %s615_s29  ;;  %p619_p9 = scmp.lt.u32.totalorder %s615_s29, %s902_s5 }
  0x19   :  { %p621_p10 = pnand %p619_p9, %p616_p8 }
  0x1b   :  { %624 = shalt.err (!%p621_p10)
}
  0x1c   :  { %s625_s1 = scalar_lea.vmem %s62_s24, 512  ;;  %p630_p12 = scmp.lt.s32.totalorder %s62_s24, %s62_s24 }
  0x1d   :  { %p626_p11 = scmp.ne.s32.totalorder %s62_s24, %s625_s1  ;;  %p631_p13 = scmp.lt.s32.totalorder %s625_s1, %s625_s1 }
  0x1f   :  { %p632_p0 = por %p631_p13, %p630_p12 }
  0x21   :  { %p633_p1 = pnand %p632_p0, %p626_p11 }
  0x23   :  { %636 = shalt.err (!%p633_p1)
}
  0x24   :  { %67 = dma.hbm_to_vmem [thread:$0]  %s902_s5, 512, %s62_s24, [#allocation9], %s734_s19, %s734_s19, %s735_s20  }
  0x25   :  { %s637_s17 = scalar_lea.hbm %s897_s0, 32 }
  0x26   :  { %p638_p2 = scmp.ne.s32.totalorder %s897_s0, %s637_s17  ;;  %p641_p3 = scmp.lt.u32.totalorder %s637_s17, %s897_s0 }
  0x28   :  { %p643_p4 = pnand %p641_p3, %p638_p2 }
  0x2a   :  { %646 = shalt.err (!%p643_p4)
}
  0x2b   :  { %s647_s25 = scalar_lea.vmem %s25_s26, 32  ;;  %p652_p6 = scmp.lt.s32.totalorder %s25_s26, %s25_s26 }
  0x2c   :  { %p648_p5 = scmp.ne.s32.totalorder %s25_s26, %s647_s25  ;;  %p653_p7 = scmp.lt.s32.totalorder %s647_s25, %s647_s25 }
  0x2e   :  { %p654_p8 = por %p653_p7, %p652_p6 }
  0x30   :  { %p655_p9 = pnand %p654_p8, %p648_p5 }
  0x32   :  { %658 = shalt.err (!%p655_p9)
}
  0x33   :  { %27 = dma.hbm_to_vmem [thread:$0]  %s897_s0, 32, %s25_s26, [#allocation3]  }
  0x34   :  { %s738_s27 = smov [#allocation7]   ;;  %s739_s29 = smov [#allocation10]  }
  0x35   :  { %s47_s28 = sshll.u32 %s738_s27, 4  ;;  %s75_s30 = sshll.u32 %s739_s29, 4  ;;  %s48_s28 = int_to_ptr.vmem [resolvable:$true] %s47_s28  ;;  %s76_s30 = int_to_ptr.vmem [resolvable:$true] %s75_s30 }
  0x36   :  { %s659_s13 = scalar_lea.hbm %s900_s3, 512 }
  0x37   :  { %p660_p10 = scmp.ne.s32.totalorder %s900_s3, %s659_s13  ;;  %p663_p11 = scmp.lt.u32.totalorder %s659_s13, %s900_s3 }
  0x39   :  { %p665_p12 = pnand %p663_p11, %p660_p10 }
  0x3b   :  { %668 = shalt.err (!%p665_p12)
}
  0x3c   :  { %s669_s0 = scalar_lea.vmem %s48_s28, 512  ;;  %p674_p0 = scmp.lt.s32.totalorder %s48_s28, %s48_s28 }
  0x3d   :  { %p670_p13 = scmp.ne.s32.totalorder %s48_s28, %s669_s0  ;;  %p675_p1 = scmp.lt.s32.totalorder %s669_s0, %s669_s0 }
  0x3f   :  { %p676_p2 = por %p675_p1, %p674_p0 }
  0x41   :  { %p677_p3 = pnand %p676_p2, %p670_p13 }
  0x43   :  { %680 = shalt.err (!%p677_p3)
}
  0x44   :  { %53 = dma.hbm_to_vmem [thread:$0]  %s900_s3, 512, %s48_s28, [#allocation6], %s734_s19, %s734_s19, %s735_s20  }
  0x45   :  { %s681_s21 = scalar_lea.hbm %s904_s7, 1024 }
  0x46   :  { %p682_p4 = scmp.ne.s32.totalorder %s904_s7, %s681_s21  ;;  %p685_p5 = scmp.lt.u32.totalorder %s681_s21, %s904_s7 }
  0x48   :  { %p687_p6 = pnand %p685_p5, %p682_p4 }
  0x4a   :  { %690 = shalt.err (!%p687_p6)
}
  0x4b   :  { %s691_s24 = scalar_lea.vmem %s76_s30, 1024  ;;  %p696_p8 = scmp.lt.s32.totalorder %s76_s30, %s76_s30 }
  0x4c   :  { %p692_p7 = scmp.ne.s32.totalorder %s76_s30, %s691_s24  ;;  %p697_p9 = scmp.lt.s32.totalorder %s691_s24, %s691_s24 }
  0x4e   :  { %p698_p10 = por %p697_p9, %p696_p8 }
  0x50   :  { %p699_p11 = pnand %p698_p10, %p692_p7 }
  0x52   :  { %702 = shalt.err (!%p699_p11)
}
  0x53   :  { %81 = dma.hbm_to_vmem [thread:$0]  %s904_s7, 1024, %s76_s30, [#allocation9], %s734_s19, %s734_s19, %s735_s20  }
  0x54   :  { %725 = dma.done.wait [#allocation3], 32  }
  0x55   :  { %726 = vsyncadd [#allocation3], 4294967264 }
  0x56   :  { %727 = dma.done.wait [#allocation6], 768  }
  0x57   :  { %728 = vsyncadd [#allocation6], 4294966528 }
  0x58   :  { %729 = dma.done.wait [#allocation9], 1536  }
  0x59   :  { %730 = vsyncadd [#allocation9], 4294965760  ;;  %v740_v0 = vmov 0.0|0.0   ;;  %vm741_vm0 = vmmov 0   ;;  %v742_v1 = vmov 0.0   ;;  %v100_v2 = vld [vmem:[#allocation5] sm:$0xff] }
  0x5a   :  { %553 = vmatprep.subr.bf16.mxu0 %v740_v0  ;;  %509 = vmatprep.mubr.msk.f32.mxu0 %vm741_vm0, %v742_v1  ;;  %v101_v3 = vld [vmem:[#allocation5 + $0x8] sm:$0xff]  ;;  %v184_v5 = vld [vmem:[#allocation7] sm:$0xff]  ;;  %v185_v6 = vld [vmem:[#allocation7 + $0x8] sm:$0xff]  ;;  %vm109_vm1 = vcmask 130048   ;;  %vm195_vm2 = vcmask 261120   ;;  %vm369_vm3 = vcmask 523264  }
  0x5b   :  { %568 = vmatprep.subr.bf16.mxu1 %v740_v0  ;;  %550 = vmatprep.mubr.msk.f32.mxu1 %vm741_vm0, %v742_v1  ;;  %v554_v4 = vpack.c.bf16 %v101_v3, %v100_v2  ;;  %v99_v7 = vld [vmem:[#allocation2] sm:$0x3]  ;;  %v557_v8 = vpack.c.bf16 %v185_v6, %v184_v5  ;;  %v186_v9 = vld [vmem:[#allocation7 + $0x10] sm:$0xff]  ;;  %v187_v10 = vld [vmem:[#allocation7 + $0x18] sm:$0xff]  ;;  %vm443_vm4 = vcmask 1041408   ;;  %v743_v49 = vmov 4  }
  0x5c   :  { %v560_v11 = vpack.c.bf16 %v187_v10, %v186_v9  ;;  %v475_v12 = vld [vmem:[%s899_s2] ss:$0 sm:$0xff]  ;;  %v269_v13 = vld [vmem:[#allocation8] sm:$0xff]  ;;  %v271_v20 = vld [vmem:[#allocation8 + $0x10] sm:$0xff]  ;;  %592 = vset.pattern.permute.xlu0 %v743_v49  ;;  %vm456_vm5 = vcmask 25600  }
  0x5d   :  { %555 = vmatpush3.bf16.msra.mxu0 %v554_v4  ;;  %v270_v14 = vld [vmem:[#allocation8 + $0x8] sm:$0xff]  ;;  %v272_v21 = vld [vmem:[#allocation8 + $0x18] sm:$0xff]  ;;  %v354_v23 = vld [vmem:[#allocation10] sm:$0xff] }
  0x5e   :  { %556 = vmatprep.subr.bf16.mxu0 %v740_v0  ;;  %v563_v18 = vpack.c.bf16 %v270_v14, %v269_v13  ;;  %v566_v22 = vpack.c.bf16 %v272_v21, %v271_v20  ;;  %v355_v24 = vld [vmem:[#allocation10 + $0x8] sm:$0xff]  ;;  %v356_v25 = vld [vmem:[#allocation10 + $0x10] sm:$0xff]  ;;  %v357_v27 = vld [vmem:[#allocation10 + $0x18] sm:$0xff] }
  0x5f   :  { %v569_v26 = vpack.c.bf16 %v355_v24, %v354_v23  ;;  %v572_v28 = vpack.c.bf16 %v357_v27, %v356_v25  ;;  %v358_v29 = vld [vmem:[#allocation10 + $0x20] sm:$0xff]  ;;  %v359_v30 = vld [vmem:[#allocation10 + $0x28] sm:$0xff]  ;;  %v360_v36 = vld [vmem:[#allocation10 + $0x30] sm:$0xff] }
  0x60   :  { %510 = vmatmul.mubr.msk.f32.vlgmr.msra.gmra.mrb[0].mxu0 %vm109_vm1, %v99_v7  ;;  %v575_v31 = vpack.c.bf16 %v359_v30, %v358_v29  ;;  %v477_v32 = vld [vmem:[%s901_s4] ss:$0 sm:$0xff]  ;;  %v361_v37 = vld [vmem:[#allocation10 + $0x38] sm:$0xff] }
  0x61   :  { %558 = vmatpush3.bf16.msra.mxu0 %v557_v8  ;;  %520 = vmatprep.mubr.msk.f32.mxu0 %vm741_vm0, %v742_v1  ;;  %v578_v38 = vpack.c.bf16 %v361_v37, %v360_v36  ;;  %v479_v39 = vld [vmem:[%s903_s6] ss:$0 sm:$0xff]  ;;  %s744_s6 = smov [#allocation11]  }
  0x62   :  { %559 = vmatprep.subr.bf16.mxu0 %v740_v0  ;;  %570 = vmatpush3.bf16.msra.mxu1 %v569_v26  ;;  %v481_v44 = vld [vmem:[%s905_s8] ss:$0 sm:$0xff]  ;;  %s464_s11 = sshll.u32 %s744_s6, 4  ;;  %s465_s11 = int_to_ptr.vmem [resolvable:$true] %s464_s11 }
  0x63   :  { %571 = vmatprep.subr.bf16.mxu1 %v740_v0  ;;  %s703_s8 = scalar_lea.vmem %s465_s11, 32  ;;  %p708_p13 = scmp.lt.s32.totalorder %s465_s11, %s465_s11 }
  0x64   :  { %p704_p12 = scmp.ne.s32.totalorder %s465_s11, %s703_s8  ;;  %p709_p0 = scmp.lt.s32.totalorder %s703_s8, %s703_s8 }
  0x65   :  { %561 = vmatpush3.bf16.msra.mxu0 %v560_v11 }
  0x66   :  { %562 = vmatprep.subr.bf16.mxu0 %v740_v0  ;;  %573 = vmatpush3.bf16.msra.mxu1 %v572_v28  ;;  %p710_p1 = por %p709_p0, %p708_p13 }
  0x67   :  { %574 = vmatprep.subr.bf16.mxu1 %v740_v0 }
  0x68   :  { %p711_p2 = pnand %p710_p1, %p704_p12 }
  0x6a   :  { %576 = vmatpush3.bf16.msra.mxu1 %v575_v31 }
  0x6b   :  { %577 = vmatprep.subr.bf16.mxu1 %v740_v0 }
  0x6e   :  { %579 = vmatpush3.bf16.msra.mxu1 %v578_v38 }
 0x133   :  { %v179_v15 = vpop.f32.mrb[0].mxu0 }
 0x134   :  { %v180_v16 = vadd.f32 %v475_v12, %v179_v15  ;;  %v511_v17 = vpop.f32.mrb[1].mxu0 }
 0x136   :  { %v183_v19 = vmax.f32 %v180_v16, 0.0 }
 0x138   :  { %521 = vmatmul.mubr.msk.f32.vlgmr.msra.gmra.mrb[2].mxu0 %vm195_vm2, %v183_v19 }
 0x139   :  { %564 = vmatpush3.bf16.msra.mxu0 %v563_v18  ;;  %531 = vmatprep.mubr.msk.f32.mxu0 %vm741_vm0, %v742_v1 }
 0x13a   :  { %565 = vmatprep.subr.bf16.mxu0 %v740_v0 }
 0x13d   :  { %567 = vmatpush3.bf16.msra.mxu0 %v566_v22 }
 0x20b   :  { %v265_v33 = vpop.f32.mrb[2].mxu0 }
 0x20c   :  { %v266_v34 = vadd.f32 %v477_v32, %v265_v33  ;;  %v522_v35 = vpop.f32.mrb[3].mxu0 }
 0x20e   :  { %532 = vmatmul.mubr.msk.f32.vlgmr.msra.gmra.mrb[4].mxu0 %vm195_vm2, %v266_v34 }
 0x2e1   :  { %v349_v40 = vpop.f32.mrb[4].mxu0 }
 0x2e2   :  { %v350_v41 = vadd.f32 %v479_v39, %v349_v40  ;;  %v533_v42 = vpop.f32.mrb[5].mxu0 }
 0x2e4   :  { %v353_v43 = vmax.f32 %v350_v41, 0.0 }
 0x2e6   :  { %551 = vmatmul.mubr.msk.f32.vlgmr.msra.gmra.mrb[0].mxu1 %vm369_vm3, %v353_v43 }
 0x3b9   :  { %v439_v45 = vpop.f32.mrb[0].mxu1 }
 0x3ba   :  { %v440_v46 = vadd.f32 %v481_v44, %v439_v45  ;;  %v552_v47 = vpop.f32.mrb[1].mxu1 }
 0x3bc   :  { %v444_v48 = vsel %vm443_vm4, %v440_v46, 0.0 }
 0x3bd   :  { %445 = vadd.xlane.f32.xlu0 %v444_v48 }
 0x44a   :  { %v446_v50 = vpop.xlane.xlu0 %445 }
 0x44b   :  { %v447_v51 = vsub.f32 %v446_v50, %v440_v46 }
 0x44d   :  { %v448_v52 = vmul.f32 0.25, %v447_v51 }
 0x44f   :  { %v449_v53 = vsub.f32 %v440_v46, %v448_v52 }
 0x451   :  { %452 = vperm.xlu0 %592, %v449_v53  }
 0x4d0   :  { %v453_v54 = vpop.permute.xlu0 %452 }
 0x4d1   :  { %v455_v55 = vadd.f32 %v453_v54, %v440_v46 }
 0x4d3   :  { %457 = vst.msk [vmem:[#allocation11] sm:$0x3] %vm456_vm5, %v455_v55 }
 0x4d4   :  { %714 = shalt.err (!%p711_p2)
}
 0x4d5   :  { %s715_s1 = scalar_lea.hbm %s906_s9, 32 }
 0x4d6   :  { %p716_p3 = scmp.ne.s32.totalorder %s906_s9, %s715_s1  ;;  %p719_p4 = scmp.lt.u32.totalorder %s715_s1, %s906_s9 }
 0x4d8   :  { %p721_p5 = pnand %p719_p4, %p716_p3 }
 0x4da   :  { %724 = shalt.err (!%p721_p5)
}
 0x4db   :  { %467 = dma.vmem_to_hbm [thread:$0]  %s465_s11, 32, %s906_s9, [#allocation4]  }
 0x4dc   :  { %731 = dma.done.wait [#allocation4], 32  }
 0x4dd   :  { %732 = vsyncadd [#allocation4], 4294967264 }
 0x4de   :  { %471 = vsyncpa [#allocation3], 1 }
 0x4df   :  { %472 = vsyncpa [#allocation6], 1 }
 0x4e0   :  { %473 = vsyncpa [#allocation9], 1 }
 0x4e1   :  { %474 = vsyncpa [#allocation4], 1 }

</bundles_post_ra>
